<compile_context>
chip_gen: v7x
topology: tpu7x:2x2x1
jax: 0.10.0
libtpu: 0.0.40
codegen_flags: <defaults>
</compile_context>

<pallas_src>
import math

import jax
import jax.numpy as jnp
from jax import lax
from jax.experimental import pallas as pl
from jax.experimental.pallas import tpu as pltpu

_INV_SQRT2 = 0.7071067811865476


# ------------------------------ Pallas kernel ------------------------------ #

def _fused_encoder_kernel(x_ref, w0_ref, b0_ref, g0_ref, be0_ref, avg_ref,
                          w1_ref, b1_ref, g1_ref, be1_ref, wp_ref, bp_ref,
                          o_ref):
    bf16 = jnp.bfloat16
    # x: [tt, F0] bf16 -- one row per super-patch, features ordered
    # (sub-patch, pixel).
    x = x_ref[...]

    # ---- layer 0: conv0 with the grouped-LN mean pre-folded into the weight.
    # d is already group-centered (exact, by construction of W0c / b0c).
    d = jnp.dot(x, w0_ref[...], preferred_element_type=jnp.float32) + b0_ref[...]
    # Grouped variance (per sub-patch token over its 16 channels, biased, eps=1e-6)
    # via the exact group-averaging matrix -- stays lane-dense 2-D on the MXU.
    var = jnp.dot((d * d).astype(bf16), avg_ref[...],
                  preferred_element_type=jnp.float32)
    y = d * lax.rsqrt(var + 1e-6)
    y = y * g0_ref[...] + be0_ref[...]
    y = 0.5 * y * (1.0 + lax.erf(y * _INV_SQRT2))        # exact (erf) GELU, f32

    # ---- layer 1: Conv2d(16->256, k=4, s=4) == one [tt,256]x[256,256] matmul.
    z = jnp.dot(y.astype(bf16), w1_ref[...],
                preferred_element_type=jnp.float32) + b1_ref[...]
    mu1 = jnp.mean(z, axis=-1, keepdims=True)            # lane reduction (XLU)
    d1 = z - mu1
    var1 = jnp.mean(d1 * d1, axis=-1, keepdims=True)
    z = d1 * lax.rsqrt(var1 + 1e-6)
    z = z * g1_ref[...] + be1_ref[...]
    z = 0.5 * z * (1.0 + lax.erf(z * _INV_SQRT2))

    # ---- final 1x1 conv: per-token linear projection to embed_dim.
    o = jnp.dot(z.astype(bf16), wp_ref[...],
                preferred_element_type=jnp.float32) + bp_ref[...]
    o_ref[...] = o.astype(o_ref.dtype)


# -------------------- one-time parameter folding (hoisted) ------------------ #

def prepare_mask_downsampler_params(params, *, kernel_size=4, stride=4,
                                    total_stride=16,
                                    compute_dtype=jnp.bfloat16):
    """Fold module params into kernel operands ONCE (outside the jitted forward).

    Matmul weights are returned in bf16 (MXU-native, halved DMA); biases /
    LayerNorm affine params stay f32 (applied after the f32 accumulators).
    """
    num_layers = int(math.log2(total_stride) // math.log2(stride))
    assert stride ** num_layers == total_stride
    assert kernel_size == stride and num_layers == 2, (
        "fused kernel is specialized to the default MaskDownSampler config")

    s = stride
    c0 = s * s            # layer-0 output channels
    g = s * s             # sub-patches per super-patch
    f0 = g * c0           # flattened super-patch features (= s**4 = 256)
    c1 = c0 * s * s       # layer-1 output channels (= 256)
    e = params["proj_w"].shape[0]

    f32 = jnp.float32
    # conv0 [C0,1,s,s] -> per-sub-patch block [pixel, channel], with the
    # grouped-LN centering (I - J/16) folded in.
    w0 = params["conv0_w"].astype(f32).reshape(c0, s * s)              # [ci, p]
    center = jnp.eye(c0, dtype=f32) - jnp.full((c0, c0), 1.0 / c0, f32)
    w0c_blk = w0.T @ center                                            # [p, ci]
    eye_g = jnp.eye(g, dtype=f32)
    w0c = jnp.kron(eye_g, w0c_blk)                                     # [F0, F0]
    avg = jnp.kron(eye_g, jnp.full((c0, c0), 1.0 / c0, f32))           # [F0, F0]
    b0v = params["conv0_b"].astype(f32)
    b0c = jnp.tile(b0v - b0v.mean(), g).reshape(1, f0)                 # centered bias
    g0 = jnp.tile(params["ln0_g"].astype(f32), g).reshape(1, f0)
    be0 = jnp.tile(params["ln0_b"].astype(f32), g).reshape(1, f0)

    # conv1 [C1, C0, s, s] -> [F0, C1] with rows in (sub-patch, channel) order.
    w1 = params["conv1_w"].astype(f32).transpose(0, 2, 3, 1).reshape(c1, g * c0).T
    b1 = params["conv1_b"].astype(f32).reshape(1, c1)
    g1 = params["ln1_g"].astype(f32).reshape(1, c1)
    be1 = params["ln1_b"].astype(f32).reshape(1, c1)

    wp = params["proj_w"].astype(f32).reshape(e, c1).T                 # [C1, E]
    bp = params["proj_b"].astype(f32).reshape(1, e)

    cd = compute_dtype
    return {
        # bf16 MXU operands (f32 accumulation happens in-kernel):
        "w0c": w0c.astype(cd), "avg": avg.astype(cd),
        "w1": w1.astype(cd), "wp": wp.astype(cd),
        # f32 post-accumulation operands:
        "b0c": b0c, "g0": g0, "be0": be0,
        "b1": b1, "g1": g1, "be1": be1, "bp": bp,
    }


# ------------------------------ pallas_call glue ---------------------------- #

def _token_tile(t):
    """Token-tile (sublane) size.

    * t <= 1024: one grid step covering all tokens (rounded up to a multiple of
      8) -- best MXU M-utilization on single-TensorCore v5e/v6e; for such small
      T a v7x megacore split is not worth halving M.
    * t > 1024: the candidate minimizing padding (>= 2 steps, so the "parallel"
      grid axis shards across v7x's two TensorCores); exact divisors of T skip
      the pad copy entirely.
    """
    if t <= 1024:
        return ((t + 7) // 8) * 8
    best_tt, best_pad = None, None
    for tt in (1024, 512, 256, 128):
        padded = ((t + tt - 1) // tt) * tt
        if best_pad is None or padded < best_pad:
            best_tt, best_pad = tt, padded
    return best_tt


def mask_downsampler_forward(x, folded, *, kernel_size=4, stride=4,
                             total_stride=16):
    s = stride
    f0 = folded["w0c"].shape[0]
    c1 = folded["w1"].shape[1]
    e = folded["wp"].shape[1]
    assert kernel_size == s and f0 == (s * s) ** 2

    n, c, h, w = x.shape
    assert c == 1 and h % total_stride == 0 and w % total_stride == 0
    ho, wo = h // total_stride, w // total_stride
    t = n * ho * wo

    # -- patchify into lane-dense [T, F0] super-patch rows (one XLA pass).
    #    feature index = (sh*s + sw)*s*s + kh*s + kw  (sub-patch-major).
    #    Cast to bf16 here: halves the relayout write and the kernel input DMA.
    xp = x.reshape(n, c, ho, s, s, wo, s, s)
    xp = xp.transpose(0, 2, 5, 3, 6, 1, 4, 7)          # n, ho, wo, sh, sw, c, kh, kw
    xp = xp.reshape(t, f0).astype(folded["w0c"].dtype)

    tt = _token_tile(t)
    t_pad = pl.cdiv(t, tt) * tt
    if t_pad != t:
        # Padded garbage rows are safe: grouped/full LN on them is guarded by
        # the +1e-6 eps (do not remove), and the rows are sliced off below.
        xp = jnp.pad(xp, ((0, t_pad - t), (0, 0)))

    out = pl.pallas_call(
        _fused_encoder_kernel,
        out_shape=jax.ShapeDtypeStruct((t_pad, e), jnp.float32),
        grid=(t_pad // tt,),
        in_specs=[
            pl.BlockSpec((tt, f0), lambda i: (i, 0)),   # super-patch tokens (bf16)
            pl.BlockSpec((f0, f0), lambda i: (0, 0)),   # conv0 weight (centering folded)
            pl.BlockSpec((1, f0), lambda i: (0, 0)),    # centered conv0 bias
            pl.BlockSpec((1, f0), lambda i: (0, 0)),    # ln0 gamma (tiled)
            pl.BlockSpec((1, f0), lambda i: (0, 0)),    # ln0 beta  (tiled)
            pl.BlockSpec((f0, f0), lambda i: (0, 0)),   # group-averaging matrix
            pl.BlockSpec((f0, c1), lambda i: (0, 0)),   # conv1 weight
            pl.BlockSpec((1, c1), lambda i: (0, 0)),    # conv1 bias
            pl.BlockSpec((1, c1), lambda i: (0, 0)),    # ln1 gamma
            pl.BlockSpec((1, c1), lambda i: (0, 0)),    # ln1 beta
            pl.BlockSpec((c1, e), lambda i: (0, 0)),    # proj weight
            pl.BlockSpec((1, e), lambda i: (0, 0)),     # proj bias
        ],
        out_specs=pl.BlockSpec((tt, e), lambda i: (i, 0)),
        compiler_params=pltpu.CompilerParams(
            dimension_semantics=("parallel",),
            # Let XLA fuse the patchify relayout / cast / pad into the token
            # operand instead of a separate HBM round trip.
            allow_input_fusion=[True] + [False] * 11,
            vmem_limit_bytes=32 * 1024 * 1024,
        ),
    )(xp, folded["w0c"], folded["b0c"], folded["g0"], folded["be0"],
      folded["avg"], folded["w1"], folded["b1"], folded["g1"], folded["be1"],
      folded["wp"], folded["bp"])

    out = out[:t]
    # TODO(synk): if the consumer accepts tokens-major [T, E] (or NHWC / bf16),
    # skip this relayout and halve the output DMA.
    return out.reshape(n, ho, wo, e).transpose(0, 3, 1, 2)          # NCHW, f32


# ----------------------------- pure-JAX reference ---------------------------- #

def reference_forward(x, params, *, stride, num_layers):
    dn = ("NCHW", "OIHW", "NCHW")
    for l in range(num_layers):
        w = params[f"conv{l}_w"]
        b = params[f"conv{l}_b"]
        x = lax.conv_general_dilated(x, w, (stride, stride), "VALID",
                                     dimension_numbers=dn) + b[None, :, None, None]
        mu = x.mean(axis=1, keepdims=True)
        var = ((x - mu) ** 2).mean(axis=1, keepdims=True)
        x = (x - mu) / jnp.sqrt(var + 1e-6)
        x = params[f"ln{l}_g"][None, :, None, None] * x + params[f"ln{l}_b"][None, :, None, None]
        x = jax.nn.gelu(x, approximate=False)
    x = lax.conv_general_dilated(x, params["proj_w"], (1, 1), "VALID",
                                 dimension_numbers=dn)
    return x + params["proj_b"][None, :, None, None]


# ----------------------------------- main ----------------------------------- #

if __name__ == "__main__":
    embed_dim = 256                 # module default
    kernel_size = 4
    stride = 4
    total_stride = 16
    num_layers = int(math.log2(total_stride) // math.log2(stride))
    assert stride ** num_layers == total_stride

    key = jax.random.PRNGKey(0)
    ks = jax.random.split(key, 16)

    params = {}
    cin = 1
    ki = 0
    for l in range(num_layers):
        cout = cin * stride ** 2
        params[f"conv{l}_w"] = 0.05 * jax.random.normal(
            ks[ki], (cout, cin, kernel_size, kernel_size), jnp.float32); ki += 1
        params[f"conv{l}_b"] = 0.01 * jax.random.normal(ks[ki], (cout,), jnp.float32); ki += 1
        params[f"ln{l}_g"] = 1.0 + 0.1 * jax.random.normal(ks[ki], (cout,), jnp.float32); ki += 1
        params[f"ln{l}_b"] = 0.01 * jax.random.normal(ks[ki], (cout,), jnp.float32); ki += 1
        cin = cout
    params["proj_w"] = 0.05 * jax.random.normal(ks[ki], (embed_dim, cin, 1, 1), jnp.float32); ki += 1
    params["proj_b"] = 0.01 * jax.random.normal(ks[ki], (embed_dim,), jnp.float32); ki += 1

    # input mask, NCHW (like PyTorch): [N=2, C=1, H=64, W=64]
    x = jax.random.normal(ks[ki], (2, 1, 64, 64), jnp.float32)

    # One-time weight folding (hoisted out of the jitted forward).
    folded = prepare_mask_downsampler_params(
        params, kernel_size=kernel_size, stride=stride, total_stride=total_stride)

    fwd = jax.jit(lambda xx, ff: mask_downsampler_forward(
        xx, ff, kernel_size=kernel_size, stride=stride, total_stride=total_stride))
    out = jax.block_until_ready(fwd(x, folded))

    ref = reference_forward(x, params, stride=stride, num_layers=num_layers)
    assert out.shape == (2, embed_dim, 64 // total_stride, 64 // total_stride), out.shape
    max_err = float(jnp.max(jnp.abs(out - ref)))
    # bf16 MXU operands (f32 accumulation) vs the exact-f32 erf reference ->
    # expect ~1e-2-level absolute differences; tolerance chosen accordingly.
    assert jnp.allclose(out, ref, atol=5e-2, rtol=5e-2), max_err

    print("KERNEL_OK")
</pallas_src>

<mosaic_0001>
module attributes {stable_mosaic.version = 11 : i64} {
  func.func @_fused_encoder_kernel(%arg0: i32, %arg1: memref<32x256xbf16, #tpu.memory_space<vmem>>, %arg2: memref<256x256xbf16, #tpu.memory_space<vmem>>, %arg3: memref<1x256xf32, #tpu.memory_space<vmem>>, %arg4: memref<1x256xf32, #tpu.memory_space<vmem>>, %arg5: memref<1x256xf32, #tpu.memory_space<vmem>>, %arg6: memref<256x256xbf16, #tpu.memory_space<vmem>>, %arg7: memref<256x256xbf16, #tpu.memory_space<vmem>>, %arg8: memref<1x256xf32, #tpu.memory_space<vmem>>, %arg9: memref<1x256xf32, #tpu.memory_space<vmem>>, %arg10: memref<1x256xf32, #tpu.memory_space<vmem>>, %arg11: memref<256x256xbf16, #tpu.memory_space<vmem>>, %arg12: memref<1x256xf32, #tpu.memory_space<vmem>>, %arg13: memref<32x256xf32, #tpu.memory_space<vmem>>) attributes {dimension_semantics = [#tpu.dimension_semantics<parallel>], iteration_bounds = array<i64: 1>, scalar_prefetch = 0 : i64, scratch_operands = 0 : i64, tpu.core_type = #tpu.core_type<tc>, window_params = [{transform_indices = @transform_0, window_bounds = array<i64: 32, 256>}, {pipeline_mode = #tpu.pipeline_mode<synchronous>, transform_indices = @transform_1, window_bounds = array<i64: 256, 256>}, {pipeline_mode = #tpu.pipeline_mode<synchronous>, transform_indices = @transform_2, window_bounds = array<i64: 1, 256>}, {pipeline_mode = #tpu.pipeline_mode<synchronous>, transform_indices = @transform_3, window_bounds = array<i64: 1, 256>}, {pipeline_mode = #tpu.pipeline_mode<synchronous>, transform_indices = @transform_4, window_bounds = array<i64: 1, 256>}, {pipeline_mode = #tpu.pipeline_mode<synchronous>, transform_indices = @transform_5, window_bounds = array<i64: 256, 256>}, {pipeline_mode = #tpu.pipeline_mode<synchronous>, transform_indices = @transform_6, window_bounds = array<i64: 256, 256>}, {pipeline_mode = #tpu.pipeline_mode<synchronous>, transform_indices = @transform_7, window_bounds = array<i64: 1, 256>}, {pipeline_mode = #tpu.pipeline_mode<synchronous>, transform_indices = @transform_8, window_bounds = array<i64: 1, 256>}, {pipeline_mode = #tpu.pipeline_mode<synchronous>, transform_indices = @transform_9, window_bounds = array<i64: 1, 256>}, {pipeline_mode = #tpu.pipeline_mode<synchronous>, transform_indices = @transform_10, window_bounds = array<i64: 256, 256>}, {pipeline_mode = #tpu.pipeline_mode<synchronous>, transform_indices = @transform_11, window_bounds = array<i64: 1, 256>}, {transform_indices = @transform_12, window_bounds = array<i64: 32, 256>}]} {
    %c0 = arith.constant 0 : index
    %c0_0 = arith.constant 0 : index
    %0 = vector.load %arg1[%c0, %c0_0] : memref<32x256xbf16, #tpu.memory_space<vmem>>, vector<32x256xbf16>
    %c0_1 = arith.constant 0 : index
    %c0_2 = arith.constant 0 : index
    %1 = vector.load %arg2[%c0_1, %c0_2] : memref<256x256xbf16, #tpu.memory_space<vmem>>, vector<256x256xbf16>
    %cst = arith.constant dense<0.000000e+00> : vector<32x256xf32>
    %2 = tpu.matmul %0, %1, %cst {dimension_numbers = #tpu.dot_dimension_numbers<[1], [0], [0], [1], [0, 0, 1, 1], [], []>} : vector<32x256xbf16>, vector<256x256xbf16>, vector<32x256xf32> -> vector<32x256xf32>
    %c0_3 = arith.constant 0 : index
    %c0_4 = arith.constant 0 : index
    %3 = vector.load %arg3[%c0_3, %c0_4] : memref<1x256xf32, #tpu.memory_space<vmem>>, vector<1x256xf32>
    %4 = vector.broadcast %3 : vector<1x256xf32> to vector<32x256xf32>
    %5 = arith.addf %2, %4 : vector<32x256xf32>
    %6 = arith.mulf %5, %5 : vector<32x256xf32>
    %7 = arith.truncf %6 : vector<32x256xf32> to vector<32x256xbf16>
    %c0_5 = arith.constant 0 : index
    %c0_6 = arith.constant 0 : index
    %8 = vector.load %arg6[%c0_5, %c0_6] : memref<256x256xbf16, #tpu.memory_space<vmem>>, vector<256x256xbf16>
    %cst_7 = arith.constant dense<0.000000e+00> : vector<32x256xf32>
    %9 = tpu.matmul %7, %8, %cst_7 {dimension_numbers = #tpu.dot_dimension_numbers<[1], [0], [0], [1], [0, 0, 1, 1], [], []>} : vector<32x256xbf16>, vector<256x256xbf16>, vector<32x256xf32> -> vector<32x256xf32>
    %cst_8 = arith.constant 9.99999997E-7 : f32
    %10 = vector.broadcast %cst_8 : f32 to vector<32x256xf32>
    %11 = arith.addf %9, %10 : vector<32x256xf32>
    %12 = math.rsqrt %11 : vector<32x256xf32>
    %13 = arith.mulf %5, %12 : vector<32x256xf32>
    %c0_9 = arith.constant 0 : index
    %c0_10 = arith.constant 0 : index
    %14 = vector.load %arg4[%c0_9, %c0_10] : memref<1x256xf32, #tpu.memory_space<vmem>>, vector<1x256xf32>
    %15 = vector.broadcast %14 : vector<1x256xf32> to vector<32x256xf32>
    %16 = arith.mulf %13, %15 : vector<32x256xf32>
    %c0_11 = arith.constant 0 : index
    %c0_12 = arith.constant 0 : index
    %17 = vector.load %arg5[%c0_11, %c0_12] : memref<1x256xf32, #tpu.memory_space<vmem>>, vector<1x256xf32>
    %18 = vector.broadcast %17 : vector<1x256xf32> to vector<32x256xf32>
    %19 = arith.addf %16, %18 : vector<32x256xf32>
    %cst_13 = arith.constant 5.000000e-01 : f32
    %20 = vector.broadcast %cst_13 : f32 to vector<32x256xf32>
    %21 = arith.mulf %20, %19 : vector<32x256xf32>
    %cst_14 = arith.constant 0.707106769 : f32
    %22 = vector.broadcast %cst_14 : f32 to vector<32x256xf32>
    %23 = arith.mulf %19, %22 : vector<32x256xf32>
    %24 = math.erf %23 : vector<32x256xf32>
    %cst_15 = arith.constant 1.000000e+00 : f32
    %25 = vector.broadcast %cst_15 : f32 to vector<32x256xf32>
    %26 = arith.addf %25, %24 : vector<32x256xf32>
    %27 = arith.mulf %21, %26 : vector<32x256xf32>
    %28 = arith.truncf %27 : vector<32x256xf32> to vector<32x256xbf16>
    %c0_16 = arith.constant 0 : index
    %c0_17 = arith.constant 0 : index
    %29 = vector.load %arg7[%c0_16, %c0_17] : memref<256x256xbf16, #tpu.memory_space<vmem>>, vector<256x256xbf16>
    %cst_18 = arith.constant dense<0.000000e+00> : vector<32x256xf32>
    %30 = tpu.matmul %28, %29, %cst_18 {dimension_numbers = #tpu.dot_dimension_numbers<[1], [0], [0], [1], [0, 0, 1, 1], [], []>} : vector<32x256xbf16>, vector<256x256xbf16>, vector<32x256xf32> -> vector<32x256xf32>
    %c0_19 = arith.constant 0 : index
    %c0_20 = arith.constant 0 : index
    %31 = vector.load %arg8[%c0_19, %c0_20] : memref<1x256xf32, #tpu.memory_space<vmem>>, vector<1x256xf32>
    %32 = vector.broadcast %31 : vector<1x256xf32> to vector<32x256xf32>
    %33 = arith.addf %30, %32 : vector<32x256xf32>
    %cst_21 = arith.constant dense<0.000000e+00> : vector<32xf32>
    %34 = vector.multi_reduction <add>, %33, %cst_21 [1] : vector<32x256xf32> to vector<32xf32>
    %35 = vector.shape_cast %34 : vector<32xf32> to vector<32x1xf32>
    %cst_22 = arith.constant 2.560000e+02 : f32
    %36 = vector.broadcast %cst_22 : f32 to vector<32x1xf32>
    %37 = arith.divf %35, %36 : vector<32x1xf32>
    %38 = vector.broadcast %37 : vector<32x1xf32> to vector<32x256xf32>
    %39 = arith.subf %33, %38 : vector<32x256xf32>
    %40 = arith.mulf %39, %39 : vector<32x256xf32>
    %cst_23 = arith.constant dense<0.000000e+00> : vector<32xf32>
    %41 = vector.multi_reduction <add>, %40, %cst_23 [1] : vector<32x256xf32> to vector<32xf32>
    %42 = vector.shape_cast %41 : vector<32xf32> to vector<32x1xf32>
    %cst_24 = arith.constant 2.560000e+02 : f32
    %43 = vector.broadcast %cst_24 : f32 to vector<32x1xf32>
    %44 = arith.divf %42, %43 : vector<32x1xf32>
    %cst_25 = arith.constant 9.99999997E-7 : f32
    %45 = vector.broadcast %cst_25 : f32 to vector<32x1xf32>
    %46 = arith.addf %44, %45 : vector<32x1xf32>
    %47 = math.rsqrt %46 : vector<32x1xf32>
    %48 = vector.broadcast %47 : vector<32x1xf32> to vector<32x256xf32>
    %49 = arith.mulf %39, %48 : vector<32x256xf32>
    %c0_26 = arith.constant 0 : index
    %c0_27 = arith.constant 0 : index
    %50 = vector.load %arg9[%c0_26, %c0_27] : memref<1x256xf32, #tpu.memory_space<vmem>>, vector<1x256xf32>
    %51 = vector.broadcast %50 : vector<1x256xf32> to vector<32x256xf32>
    %52 = arith.mulf %49, %51 : vector<32x256xf32>
    %c0_28 = arith.constant 0 : index
    %c0_29 = arith.constant 0 : index
    %53 = vector.load %arg10[%c0_28, %c0_29] : memref<1x256xf32, #tpu.memory_space<vmem>>, vector<1x256xf32>
    %54 = vector.broadcast %53 : vector<1x256xf32> to vector<32x256xf32>
    %55 = arith.addf %52, %54 : vector<32x256xf32>
    %cst_30 = arith.constant 5.000000e-01 : f32
    %56 = vector.broadcast %cst_30 : f32 to vector<32x256xf32>
    %57 = arith.mulf %56, %55 : vector<32x256xf32>
    %cst_31 = arith.constant 0.707106769 : f32
    %58 = vector.broadcast %cst_31 : f32 to vector<32x256xf32>
    %59 = arith.mulf %55, %58 : vector<32x256xf32>
    %60 = math.erf %59 : vector<32x256xf32>
    %cst_32 = arith.constant 1.000000e+00 : f32
    %61 = vector.broadcast %cst_32 : f32 to vector<32x256xf32>
    %62 = arith.addf %61, %60 : vector<32x256xf32>
    %63 = arith.mulf %57, %62 : vector<32x256xf32>
    %64 = arith.truncf %63 : vector<32x256xf32> to vector<32x256xbf16>
    %c0_33 = arith.constant 0 : index
    %c0_34 = arith.constant 0 : index
    %65 = vector.load %arg11[%c0_33, %c0_34] : memref<256x256xbf16, #tpu.memory_space<vmem>>, vector<256x256xbf16>
    %cst_35 = arith.constant dense<0.000000e+00> : vector<32x256xf32>
    %66 = tpu.matmul %64, %65, %cst_35 {dimension_numbers = #tpu.dot_dimension_numbers<[1], [0], [0], [1], [0, 0, 1, 1], [], []>} : vector<32x256xbf16>, vector<256x256xbf16>, vector<32x256xf32> -> vector<32x256xf32>
    %c0_36 = arith.constant 0 : index
    %c0_37 = arith.constant 0 : index
    %67 = vector.load %arg12[%c0_36, %c0_37] : memref<1x256xf32, #tpu.memory_space<vmem>>, vector<1x256xf32>
    %68 = vector.broadcast %67 : vector<1x256xf32> to vector<32x256xf32>
    %69 = arith.addf %66, %68 : vector<32x256xf32>
    %c0_38 = arith.constant 0 : index
    %c0_39 = arith.constant 0 : index
    %70 = vector.load %arg13[%c0_38, %c0_39] : memref<32x256xf32, #tpu.memory_space<vmem>>, vector<32x256xf32>
    tpu.vector_store %arg13[%c0_38, %c0_39], %69 {strides = array<i32>} : memref<32x256xf32, #tpu.memory_space<vmem>>, vector<32x256xf32>,
    return
  }
  func.func @transform_0(%arg0: i32) -> (i32, i32) {
    %c0_i32 = arith.constant 0 : i32
    %c0_i32_0 = arith.constant 0 : i32
    return %arg0, %c0_i32 : i32, i32
  }
  func.func @transform_1(%arg0: i32) -> (i32, i32) {
    %c0_i32 = arith.constant 0 : i32
    %c0_i32_0 = arith.constant 0 : i32
    %c0_i32_1 = arith.constant 0 : i32
    return %c0_i32, %c0_i32_0 : i32, i32
  }
  func.func @transform_2(%arg0: i32) -> (i32, i32) {
    %c0_i32 = arith.constant 0 : i32
    %c0_i32_0 = arith.constant 0 : i32
    %c0_i32_1 = arith.constant 0 : i32
    return %c0_i32, %c0_i32_0 : i32, i32
  }
  func.func @transform_3(%arg0: i32) -> (i32, i32) {
    %c0_i32 = arith.constant 0 : i32
    %c0_i32_0 = arith.constant 0 : i32
    %c0_i32_1 = arith.constant 0 : i32
    return %c0_i32, %c0_i32_0 : i32, i32
  }
  func.func @transform_4(%arg0: i32) -> (i32, i32) {
    %c0_i32 = arith.constant 0 : i32
    %c0_i32_0 = arith.constant 0 : i32
    %c0_i32_1 = arith.constant 0 : i32
    return %c0_i32, %c0_i32_0 : i32, i32
  }
  func.func @transform_5(%arg0: i32) -> (i32, i32) {
    %c0_i32 = arith.constant 0 : i32
    %c0_i32_0 = arith.constant 0 : i32
    %c0_i32_1 = arith.constant 0 : i32
    return %c0_i32, %c0_i32_0 : i32, i32
  }
  func.func @transform_6(%arg0: i32) -> (i32, i32) {
    %c0_i32 = arith.constant 0 : i32
    %c0_i32_0 = arith.constant 0 : i32
    %c0_i32_1 = arith.constant 0 : i32
    return %c0_i32, %c0_i32_0 : i32, i32
  }
  func.func @transform_7(%arg0: i32) -> (i32, i32) {
    %c0_i32 = arith.constant 0 : i32
    %c0_i32_0 = arith.constant 0 : i32
    %c0_i32_1 = arith.constant 0 : i32
    return %c0_i32, %c0_i32_0 : i32, i32
  }
  func.func @transform_8(%arg0: i32) -> (i32, i32) {
    %c0_i32 = arith.constant 0 : i32
    %c0_i32_0 = arith.constant 0 : i32
    %c0_i32_1 = arith.constant 0 : i32
    return %c0_i32, %c0_i32_0 : i32, i32
  }
  func.func @transform_9(%arg0: i32) -> (i32, i32) {
    %c0_i32 = arith.constant 0 : i32
    %c0_i32_0 = arith.constant 0 : i32
    %c0_i32_1 = arith.constant 0 : i32
    return %c0_i32, %c0_i32_0 : i32, i32
  }
  func.func @transform_10(%arg0: i32) -> (i32, i32) {
    %c0_i32 = arith.constant 0 : i32
    %c0_i32_0 = arith.constant 0 : i32
    %c0_i32_1 = arith.constant 0 : i32
    return %c0_i32, %c0_i32_0 : i32, i32
  }
  func.func @transform_11(%arg0: i32) -> (i32, i32) {
    %c0_i32 = arith.constant 0 : i32
    %c0_i32_0 = arith.constant 0 : i32
    %c0_i32_1 = arith.constant 0 : i32
    return %c0_i32, %c0_i32_0 : i32, i32
  }
  func.func @transform_12(%arg0: i32) -> (i32, i32) {
    %c0_i32 = arith.constant 0 : i32
    %c0_i32_0 = arith.constant 0 : i32
    return %arg0, %c0_i32 : i32, i32
  }
}

</mosaic_0001>

<bundles_post_ra>
// kernel: _lambda_.1
= control target key start
LH: loop header
LB: loop body
LE: loop exit
PB: predicated region body
PF: predicated region fallthrough
CT: control target
= control target key end

     0   :  { %s2344_s1 = inlined_call_operand.vmem [shape: bf16[256,256], index: 1, kind: input, shape index: {}]   ;;  %s2345_s0 = inlined_call_operand.vmem [shape: bf16[32,256], index: 0, kind: input, shape index: {}]   ;;  %s2346_s5 = inlined_call_operand.vmem [shape: bf16[256,256], index: 5, kind: input, shape index: {}]   ;;  %s2347_s6 = inlined_call_operand.vmem [shape: bf16[256,256], index: 6, kind: input, shape index: {}]   ;;  %s2348_s2 = inlined_call_operand.vmem [shape: f32[1,256], index: 2, kind: input, shape index: {}]   ;;  %s2349_s3 = inlined_call_operand.vmem [shape: f32[1,256], index: 3, kind: input, shape index: {}]   ;;  %s2350_s4 = inlined_call_operand.vmem [shape: f32[1,256], index: 4, kind: input, shape index: {}]   ;;  %s2351_s7 = inlined_call_operand.vmem [shape: f32[1,256], index: 7, kind: input, shape index: {}]   ;;  %s2352_s10 = inlined_call_operand.vmem [shape: bf16[256,256], index: 10, kind: input, shape index: {}]   ;;  %s2353_s8 = inlined_call_operand.vmem [shape: f32[1,256], index: 8, kind: input, shape index: {}]   ;;  %s2354_s9 = inlined_call_operand.vmem [shape: f32[1,256], index: 9, kind: input, shape index: {}]   ;;  %s2355_s11 = inlined_call_operand.vmem [shape: f32[1,256], index: 11, kind: input, shape index: {}]   ;;  %s2356_s12 = inlined_call_operand.vmem [shape: f32[32,256], index: 12, kind: output, shape index: {}]  }
   0x1   :  { %v1486_v0 = vld [vmem:[%s2344_s1 + $0x4] ss:$8 sps:$4 sm:$0xff]   ;;  %v1488_v1 = vld [vmem:[%s2344_s1] ss:$8 sps:$4 sm:$0xff]   ;;  %v1489_v2 = vld [vmem:[%s2344_s1 + $0x14] ss:$8 sps:$4 sm:$0xff]  }
   0x2   :  { %269 = vmatprep.subr.bf16.mxu0 %v1486_v0  ;;  %v1491_v3 = vld [vmem:[%s2344_s1 + $0x10] ss:$8 sps:$4 sm:$0xff]   ;;  %v1492_v4 = vld [vmem:[%s2344_s1 + $0x24] ss:$8 sps:$4 sm:$0xff]   ;;  %v1494_v5 = vld [vmem:[%s2344_s1 + $0x20] ss:$8 sps:$4 sm:$0xff]  }
   0x3   :  { %270 = vmatpush1.bf16.msra.mxu0 %v1488_v1  ;;  %v1495_v6 = vld [vmem:[%s2344_s1 + $0x34] ss:$8 sps:$4 sm:$0xff]   ;;  %v1497_v7 = vld [vmem:[%s2344_s1 + $0x30] ss:$8 sps:$4 sm:$0xff]   ;;  %v1498_v8 = vld [vmem:[%s2344_s1 + $0x44] ss:$8 sps:$4 sm:$0xff]  }
   0x4   :  { %271 = vmatprep.subr.bf16.mxu0 %v1489_v2  ;;  %v1500_v9 = vld [vmem:[%s2344_s1 + $0x40] ss:$8 sps:$4 sm:$0xff]   ;;  %v1501_v10 = vld [vmem:[%s2344_s1 + $0x54] ss:$8 sps:$4 sm:$0xff]   ;;  %v1503_v11 = vld [vmem:[%s2344_s1 + $0x50] ss:$8 sps:$4 sm:$0xff]  }
   0x5   :  { %v1504_v12 = vld [vmem:[%s2344_s1 + $0x64] ss:$8 sps:$4 sm:$0xff]   ;;  %v1506_v14 = vld [vmem:[%s2344_s1 + $0x60] ss:$8 sps:$4 sm:$0xff]   ;;  %v1507_v15 = vld [vmem:[%s2344_s1 + $0x74] ss:$8 sps:$4 sm:$0xff]  }
   0x6   :  { %v1536_v13 = vld [vmem:[%s2345_s0 + $0x4] ss:$8 sps:$4 sm:$0xff]   ;;  %v1542_v17 = vld [vmem:[%s2346_s5] ss:$8 sps:$4 sm:$0xff]   ;;  %v1509_v18 = vld [vmem:[%s2344_s1 + $0x70] ss:$8 sps:$4 sm:$0xff]  }
   0x7   :  { %272 = vmatpush1.bf16.msra.mxu0 %v1491_v3  ;;  %301 = vmatprep.mubr.bf16.mxu0 %v1536_v13  ;;  %v1540_v16 = vld [vmem:[%s2346_s5 + $0x4] ss:$8 sps:$4 sm:$0xff]   ;;  %v1543_v19 = vld [vmem:[%s2346_s5 + $0x14] ss:$8 sps:$4 sm:$0xff]   ;;  %v1545_v21 = vld [vmem:[%s2346_s5 + $0x10] ss:$8 sps:$4 sm:$0xff]  }
   0x8   :  { %273 = vmatprep.subr.bf16.mxu0 %v1492_v4  ;;  %526 = vmatprep.subr.bf16.mxu1 %v1540_v16  ;;  %v1510_v20 = vld [vmem:[%s2344_s1 + $0x84] ss:$8 sps:$4 sm:$0xff]   ;;  %v1512_v23 = vld [vmem:[%s2344_s1 + $0x80] ss:$8 sps:$4 sm:$0xff]   ;;  %v1513_v24 = vld [vmem:[%s2344_s1 + $0x94] ss:$8 sps:$4 sm:$0xff]   ;;  %v79_v16 = vlaneseq }
   0x9   :  { %527 = vmatpush1.bf16.msra.mxu1 %v1542_v17  ;;  %v1546_v22 = vld [vmem:[%s2346_s5 + $0x24] ss:$8 sps:$4 sm:$0xff]   ;;  %v1548_v25 = vld [vmem:[%s2346_s5 + $0x20] ss:$8 sps:$4 sm:$0xff]   ;;  %v1549_v26 = vld [vmem:[%s2346_s5 + $0x34] ss:$8 sps:$4 sm:$0xff]  }
   0xa   :  { %528 = vmatprep.subr.bf16.mxu1 %v1543_v19  ;;  %v1515_v27 = vld [vmem:[%s2344_s1 + $0x90] ss:$8 sps:$4 sm:$0xff]   ;;  %v1516_v28 = vld [vmem:[%s2344_s1 + $0xa4] ss:$8 sps:$4 sm:$0xff]   ;;  %v1518_v31 = vld [vmem:[%s2344_s1 + $0xa0] ss:$8 sps:$4 sm:$0xff]  }
   0xb   :  { %274 = vmatpush1.bf16.msra.mxu0 %v1494_v5  ;;  %v1551_v29 = vld [vmem:[%s2346_s5 + $0x30] ss:$8 sps:$4 sm:$0xff]   ;;  %v1552_v30 = vld [vmem:[%s2346_s5 + $0x44] ss:$8 sps:$4 sm:$0xff]   ;;  %v1519_v32 = vld [vmem:[%s2344_s1 + $0xb4] ss:$8 sps:$4 sm:$0xff]  }
   0xc   :  { %275 = vmatprep.subr.bf16.mxu0 %v1495_v6  ;;  %v1554_v33 = vld [vmem:[%s2346_s5 + $0x40] ss:$8 sps:$4 sm:$0xff]   ;;  %v1555_v34 = vld [vmem:[%s2346_s5 + $0x54] ss:$8 sps:$4 sm:$0xff]   ;;  %v1521_v35 = vld [vmem:[%s2344_s1 + $0xb0] ss:$8 sps:$4 sm:$0xff]  }
   0xd   :  { %529 = vmatpush1.bf16.msra.mxu1 %v1545_v21  ;;  %v1557_v36 = vld [vmem:[%s2346_s5 + $0x50] ss:$8 sps:$4 sm:$0xff]   ;;  %v1522_v37 = vld [vmem:[%s2344_s1 + $0xc4] ss:$8 sps:$4 sm:$0xff]   ;;  %v1524_v39 = vld [vmem:[%s2344_s1 + $0xc0] ss:$8 sps:$4 sm:$0xff]  }
   0xe   :  { %530 = vmatprep.subr.bf16.mxu1 %v1546_v22  ;;  %v1558_v38 = vld [vmem:[%s2346_s5 + $0x64] ss:$8 sps:$4 sm:$0xff]   ;;  %v1560_v40 = vld [vmem:[%s2346_s5 + $0x60] ss:$8 sps:$4 sm:$0xff]   ;;  %v1525_v41 = vld [vmem:[%s2344_s1 + $0xd4] ss:$8 sps:$4 sm:$0xff]  }
   0xf   :  { %276 = vmatpush1.bf16.msra.mxu0 %v1497_v7  ;;  %v1561_v42 = vld [vmem:[%s2346_s5 + $0x74] ss:$8 sps:$4 sm:$0xff]   ;;  %v1527_v43 = vld [vmem:[%s2344_s1 + $0xd0] ss:$8 sps:$4 sm:$0xff]   ;;  %v1528_v45 = vld [vmem:[%s2344_s1 + $0xe4] ss:$8 sps:$4 sm:$0xff]  }
  0x10   :  { %277 = vmatprep.subr.bf16.mxu0 %v1498_v8  ;;  %v1563_v44 = vld [vmem:[%s2346_s5 + $0x70] ss:$8 sps:$4 sm:$0xff]   ;;  %v1564_v46 = vld [vmem:[%s2346_s5 + $0x84] ss:$8 sps:$4 sm:$0xff]   ;;  %v1530_v47 = vld [vmem:[%s2344_s1 + $0xe0] ss:$8 sps:$4 sm:$0xff]  }
  0x11   :  { %531 = vmatpush1.bf16.msra.mxu1 %v1548_v25  ;;  %v1566_v48 = vld [vmem:[%s2346_s5 + $0x80] ss:$8 sps:$4 sm:$0xff]   ;;  %v1531_v49 = vld [vmem:[%s2344_s1 + $0xf4] ss:$8 sps:$4 sm:$0xff]   ;;  %v1533_v51 = vld [vmem:[%s2344_s1 + $0xf0] ss:$8 sps:$4 sm:$0xff]  }
  0x12   :  { %532 = vmatprep.subr.bf16.mxu1 %v1549_v26  ;;  %v1567_v50 = vld [vmem:[%s2346_s5 + $0x94] ss:$8 sps:$4 sm:$0xff]   ;;  %v1569_v52 = vld [vmem:[%s2346_s5 + $0x90] ss:$8 sps:$4 sm:$0xff]   ;;  %v1570_v53 = vld [vmem:[%s2346_s5 + $0xa4] ss:$8 sps:$4 sm:$0xff]  }
  0x13   :  { %278 = vmatpush1.bf16.msra.mxu0 %v1500_v9  ;;  %v1534_v54 = vld [vmem:[%s2345_s0] ss:$8 sps:$4 sm:$0xff]   ;;  %v1537_v55 = vld [vmem:[%s2345_s0 + $0x14] ss:$8 sps:$4 sm:$0xff]   ;;  %v1575_v58 = vld [vmem:[%s2346_s5 + $0xb0] ss:$8 sps:$4 sm:$0xff]  }
  0x14   :  { %279 = vmatprep.subr.bf16.mxu0 %v1501_v10  ;;  %v1572_v56 = vld [vmem:[%s2346_s5 + $0xa0] ss:$8 sps:$4 sm:$0xff]   ;;  %v1573_v57 = vld [vmem:[%s2346_s5 + $0xb4] ss:$8 sps:$4 sm:$0xff]   ;;  %v1576_v59 = vld [vmem:[%s2346_s5 + $0xc4] ss:$8 sps:$4 sm:$0xff]  }
  0x15   :  { %533 = vmatpush1.bf16.msra.mxu1 %v1551_v29  ;;  %v1539_v60 = vld [vmem:[%s2345_s0 + $0x10] ss:$8 sps:$4 sm:$0xff]   ;;  %v1578_v61 = vld [vmem:[%s2346_s5 + $0xc0] ss:$8 sps:$4 sm:$0xff]   ;;  %v1579_v62 = vld [vmem:[%s2346_s5 + $0xd4] ss:$8 sps:$4 sm:$0xff]  }
  0x16   :  { %534 = vmatprep.subr.bf16.mxu1 %v1552_v30  ;;  %v1581_v63 = vld [vmem:[%s2346_s5 + $0xd0] ss:$8 sps:$4 sm:$0xff]   ;;  %v1582_v0 = vld [vmem:[%s2346_s5 + $0xe4] ss:$8 sps:$4 sm:$0xff]   ;;  %v1584_v1 = vld [vmem:[%s2346_s5 + $0xe0] ss:$8 sps:$4 sm:$0xff]  }
  0x17   :  { %280 = vmatpush1.bf16.msra.mxu0 %v1503_v11  ;;  %v1585_v2 = vld [vmem:[%s2346_s5 + $0xf4] ss:$8 sps:$4 sm:$0xff]   ;;  %v1587_v3 = vld [vmem:[%s2346_s5 + $0xf0] ss:$8 sps:$4 sm:$0xff]   ;;  %v1588_v4 = vld [vmem:[%s2347_s6] ss:$8 sps:$4 sm:$0xff]  }
  0x18   :  { %281 = vmatprep.subr.bf16.mxu0 %v1504_v12  ;;  %v1590_v5 = vld [vmem:[%s2347_s6 + $0x4] ss:$8 sps:$4 sm:$0xff]   ;;  %v1593_v6 = vld [vmem:[%s2347_s6 + $0x14] ss:$8 sps:$4 sm:$0xff]   ;;  %v1591_v7 = vld [vmem:[%s2347_s6 + $0x10] ss:$8 sps:$4 sm:$0xff]  }
  0x19   :  { %535 = vmatpush1.bf16.msra.mxu1 %v1554_v33  ;;  %v1596_v8 = vld [vmem:[%s2347_s6 + $0x24] ss:$8 sps:$4 sm:$0xff]   ;;  %v1594_v9 = vld [vmem:[%s2347_s6 + $0x20] ss:$8 sps:$4 sm:$0xff]   ;;  %v1599_v10 = vld [vmem:[%s2347_s6 + $0x34] ss:$8 sps:$4 sm:$0xff]  }
  0x1a   :  { %536 = vmatprep.subr.bf16.mxu1 %v1555_v34  ;;  %v1597_v11 = vld [vmem:[%s2347_s6 + $0x30] ss:$8 sps:$4 sm:$0xff]   ;;  %v1602_v12 = vld [vmem:[%s2347_s6 + $0x44] ss:$8 sps:$4 sm:$0xff]   ;;  %v1600_v13 = vld [vmem:[%s2347_s6 + $0x40] ss:$8 sps:$4 sm:$0xff]  }
  0x1b   :  { %282 = vmatpush1.bf16.msra.mxu0 %v1506_v14  ;;  %v1605_v14 = vld [vmem:[%s2347_s6 + $0x54] ss:$8 sps:$4 sm:$0xff]   ;;  %v80_v17 = vshrl.u32 %v79_v16, 7  ;;  %v77_v19 = vld [vmem:[%s2348_s2] sm:$0x3] }
  0x1c   :  { %283 = vmatprep.subr.bf16.mxu0 %v1507_v15  ;;  %v1603_v15 = vld [vmem:[%s2347_s6 + $0x50] ss:$8 sps:$4 sm:$0xff]   ;;  %v595_v16 = vld [vmem:[%s2349_s3] sm:$0x3] }
  0x1d   :  { %537 = vmatpush1.bf16.msra.mxu1 %v1557_v36 }
  0x1e   :  { %538 = vmatprep.subr.bf16.mxu1 %v1558_v38 }
  0x1f   :  { %284 = vmatpush1.bf16.msra.mxu0 %v1509_v18  ;;  %v2045_v18 = vsub.s32 1, %v80_v17 }
  0x20   :  { %285 = vmatprep.subr.bf16.mxu0 %v1510_v20  ;;  %v2050_v20 = vsub.s32 0, %v80_v17 }
  0x21   :  { %539 = vmatpush1.bf16.msra.mxu1 %v1560_v40  ;;  %v86_v21 = vrot.slane %v77_v19, %v2045_v18 }
  0x22   :  { %540 = vmatprep.subr.bf16.mxu1 %v1561_v42  ;;  %v82_v22 = vrot.slane %v77_v19, %v2050_v20 }
  0x23   :  { %286 = vmatpush1.bf16.msra.mxu0 %v1512_v23 }
  0x24   :  { %287 = vmatprep.subr.bf16.mxu0 %v1513_v24 }
  0x25   :  { %541 = vmatpush1.bf16.msra.mxu1 %v1563_v44 }
  0x26   :  { %542 = vmatprep.subr.bf16.mxu1 %v1564_v46 }
  0x27   :  { %288 = vmatpush1.bf16.msra.mxu0 %v1515_v27 }
  0x28   :  { %289 = vmatprep.subr.bf16.mxu0 %v1516_v28 }
  0x29   :  { %543 = vmatpush1.bf16.msra.mxu1 %v1566_v48 }
  0x2a   :  { %544 = vmatprep.subr.bf16.mxu1 %v1567_v50 }
  0x2b   :  { %290 = vmatpush1.bf16.msra.mxu0 %v1518_v31 }
  0x2c   :  { %291 = vmatprep.subr.bf16.mxu0 %v1519_v32 }
  0x2d   :  { %545 = vmatpush1.bf16.msra.mxu1 %v1569_v52  ;;  %v1606_v52 = vld [vmem:[%s2347_s6 + $0x60] ss:$8 sps:$4 sm:$0xff]  }
  0x2e   :  { %546 = vmatprep.subr.bf16.mxu1 %v1570_v53  ;;  %v1611_v53 = vld [vmem:[%s2347_s6 + $0x74] ss:$8 sps:$4 sm:$0xff]  }
  0x2f   :  { %292 = vmatpush1.bf16.msra.mxu0 %v1521_v35 }
  0x30   :  { %293 = vmatprep.subr.bf16.mxu0 %v1522_v37 }
  0x31   :  { %547 = vmatpush1.bf16.msra.mxu1 %v1572_v56  ;;  %v1612_v56 = vld [vmem:[%s2347_s6 + $0x80] ss:$8 sps:$4 sm:$0xff]  }
  0x32   :  { %548 = vmatprep.subr.bf16.mxu1 %v1573_v57  ;;  %v1617_v57 = vld [vmem:[%s2347_s6 + $0x94] ss:$8 sps:$4 sm:$0xff]  }
  0x33   :  { %294 = vmatpush1.bf16.msra.mxu0 %v1524_v39 }
  0x34   :  { %295 = vmatprep.subr.bf16.mxu0 %v1525_v41 }
  0x35   :  { %549 = vmatpush1.bf16.msra.mxu1 %v1575_v58  ;;  %v1615_v58 = vld [vmem:[%s2347_s6 + $0x90] ss:$8 sps:$4 sm:$0xff]  }
  0x36   :  { %550 = vmatprep.subr.bf16.mxu1 %v1576_v59  ;;  %v1620_v59 = vld [vmem:[%s2347_s6 + $0xa4] ss:$8 sps:$4 sm:$0xff]  }
  0x37   :  { %296 = vmatpush1.bf16.msra.mxu0 %v1527_v43 }
  0x38   :  { %297 = vmatprep.subr.bf16.mxu0 %v1528_v45 }
  0x39   :  { %551 = vmatpush1.bf16.msra.mxu1 %v1578_v61  ;;  %v1623_v61 = vld [vmem:[%s2347_s6 + $0xb4] ss:$8 sps:$4 sm:$0xff]  }
  0x3a   :  { %552 = vmatprep.subr.bf16.mxu1 %v1579_v62  ;;  %v1621_v62 = vld [vmem:[%s2347_s6 + $0xb0] ss:$8 sps:$4 sm:$0xff]  }
  0x3b   :  { %298 = vmatpush1.bf16.msra.mxu0 %v1530_v47 }
  0x3c   :  { %299 = vmatprep.subr.bf16.mxu0 %v1531_v49 }
  0x3d   :  { %553 = vmatpush1.bf16.msra.mxu1 %v1581_v63  ;;  %v1624_v63 = vld [vmem:[%s2347_s6 + $0xc0] ss:$8 sps:$4 sm:$0xff]  }
  0x3e   :  { %554 = vmatprep.subr.bf16.mxu1 %v1582_v0  ;;  %v1626_v0 = vld [vmem:[%s2347_s6 + $0xc4] ss:$8 sps:$4 sm:$0xff]  }
  0x3f   :  { %300 = vmatpush1.bf16.msra.mxu0 %v1533_v51  ;;  %v1608_v51 = vld [vmem:[%s2347_s6 + $0x64] ss:$8 sps:$4 sm:$0xff]  }
  0x40   :  { %883 = vmatprep.subr.bf16.mxu0 %v1590_v5  ;;  %v1635_v5 = vld [vmem:[%s2347_s6 + $0xf4] ss:$8 sps:$4 sm:$0xff]  }
  0x41   :  { %555 = vmatpush1.bf16.msra.mxu1 %v1584_v1  ;;  %v1629_v1 = vld [vmem:[%s2347_s6 + $0xd4] ss:$8 sps:$4 sm:$0xff]  }
  0x42   :  { %302 = vmatmul.mubr.bf16.vlgmr.msra.gmra.mrb[0].mxu0 %v1534_v54  ;;  %556 = vmatprep.subr.bf16.mxu1 %v1585_v2  ;;  %v1609_v54 = vld [vmem:[%s2347_s6 + $0x70] ss:$8 sps:$4 sm:$0xff]  }
  0x43   :  { %311 = vmatprep.mubr.bf16.mxu0 %v1537_v55  ;;  %884 = vmatpush1.bf16.msra.mxu0 %v1588_v4  ;;  %v1614_v55 = vld [vmem:[%s2347_s6 + $0x84] ss:$8 sps:$4 sm:$0xff]   ;;  %v1627_v2 = vld [vmem:[%s2347_s6 + $0xd0] ss:$8 sps:$4 sm:$0xff]   ;;  %v1630_v4 = vld [vmem:[%s2347_s6 + $0xe0] ss:$8 sps:$4 sm:$0xff]  }
  0x44   :  { %885 = vmatprep.subr.bf16.mxu0 %v1593_v6  ;;  %v1633_v6 = vld [vmem:[%s2347_s6 + $0xf0] ss:$8 sps:$4 sm:$0xff]  }
  0x45   :  { %557 = vmatpush1.bf16.msra.mxu1 %v1587_v3  ;;  %v1632_v3 = vld [vmem:[%s2347_s6 + $0xe4] ss:$8 sps:$4 sm:$0xff]  }
  0x47   :  { %886 = vmatpush1.bf16.msra.mxu0 %v1591_v7 }
  0x48   :  { %887 = vmatprep.subr.bf16.mxu0 %v1596_v8 }
  0x4a   :  { %312 = vmatmul.mubr.bf16.gmra.mrb[4].mxu0 %v1539_v60  ;;  %v1618_v60 = vld [vmem:[%s2347_s6 + $0xa0] ss:$8 sps:$4 sm:$0xff]  }
  0x4b   :  { %888 = vmatpush1.bf16.msra.mxu0 %v1594_v9 }
  0x4c   :  { %889 = vmatprep.subr.bf16.mxu0 %v1599_v10 }
  0x4f   :  { %890 = vmatpush1.bf16.msra.mxu0 %v1597_v11 }
  0x50   :  { %891 = vmatprep.subr.bf16.mxu0 %v1602_v12 }
  0x53   :  { %892 = vmatpush1.bf16.msra.mxu0 %v1600_v13 }
  0x54   :  { %893 = vmatprep.subr.bf16.mxu0 %v1605_v14 }
  0x57   :  { %894 = vmatpush1.bf16.msra.mxu0 %v1603_v15 }
  0x58   :  { %895 = vmatprep.subr.bf16.mxu0 %v1608_v51 }
  0x5b   :  { %896 = vmatpush1.bf16.msra.mxu0 %v1606_v52 }
  0x5c   :  { %897 = vmatprep.subr.bf16.mxu0 %v1611_v53 }
  0x5f   :  { %898 = vmatpush1.bf16.msra.mxu0 %v1609_v54 }
  0x60   :  { %899 = vmatprep.subr.bf16.mxu0 %v1614_v55 }
  0x63   :  { %900 = vmatpush1.bf16.msra.mxu0 %v1612_v56 }
  0x64   :  { %901 = vmatprep.subr.bf16.mxu0 %v1617_v57 }
  0x67   :  { %902 = vmatpush1.bf16.msra.mxu0 %v1615_v58 }
  0x68   :  { %903 = vmatprep.subr.bf16.mxu0 %v1620_v59 }
  0x6b   :  { %904 = vmatpush1.bf16.msra.mxu0 %v1618_v60 }
  0x6c   :  { %905 = vmatprep.subr.bf16.mxu0 %v1623_v61 }
  0x6f   :  { %906 = vmatpush1.bf16.msra.mxu0 %v1621_v62 }
  0x70   :  { %907 = vmatprep.subr.bf16.mxu0 %v1626_v0 }
  0x73   :  { %908 = vmatpush1.bf16.msra.mxu0 %v1624_v63 }
  0x74   :  { %909 = vmatprep.subr.bf16.mxu0 %v1629_v1 }
  0x77   :  { %910 = vmatpush1.bf16.msra.mxu0 %v1627_v2 }
  0x78   :  { %911 = vmatprep.subr.bf16.mxu0 %v1632_v3 }
  0x7b   :  { %912 = vmatpush1.bf16.msra.mxu0 %v1630_v4 }
  0x7c   :  { %913 = vmatprep.subr.bf16.mxu0 %v1635_v5 }
  0x7f   :  { %914 = vmatpush1.bf16.msra.mxu0 %v1633_v6 }
 0x115   :  { %v303_v23 = vpop.f32.mrb[0].mxu0 }
 0x116   :  { %v305_v24 = vpop.f32.mrb[1].mxu0  ;;  %v2056_v27 = vadd.f32 %v303_v23, %v82_v22  ;;  %v615_v23 = vld [vmem:[%s2350_s4] sm:$0x3] }
 0x117   :  { %v2054_v25 = vadd.f32 %v305_v24, %v86_v21  ;;  %v307_v26 = vpop.f32.mrb[2].mxu0 }
 0x118   :  { %v2058_v28 = vadd.f32 %v307_v26, %v82_v22  ;;  %v309_v29 = vpop.f32.mrb[3].mxu0  ;;  %v322_v34 = vmul.f32 %v2056_v27, %v2056_v27 }
 0x119   :  { %v2060_v30 = vadd.f32 %v309_v29, %v86_v21  ;;  %v323_v32 = vmul.f32 %v2054_v25, %v2054_v25  ;;  %v600_v29 = vrot.slane %v595_v16, %v2050_v20 }
 0x11a   :  { %v324_v31 = vmul.f32 %v2058_v28, %v2058_v28 }
 0x11b   :  { %v325_v33 = vmul.f32 %v2060_v30, %v2060_v30 }
 0x11c   :  { %v330_v38 = vpack.c.bf16 %v324_v31, %v322_v34 }
 0x11d   :  { %v313_v35 = vpop.f32.mrb[4].mxu0  ;;  %v331_v36 = vpack.c.bf16 %v325_v33, %v323_v32  ;;  %v604_v33 = vrot.slane %v595_v16, %v2045_v18 }
 0x11e   :  { %v315_v37 = vpop.f32.mrb[5].mxu0  ;;  %v2072_v41 = vadd.f32 %v313_v35, %v82_v22 }
 0x11f   :  { %v2070_v39 = vadd.f32 %v315_v37, %v86_v21  ;;  %v317_v40 = vpop.f32.mrb[6].mxu0  ;;  %558 = vmatprep.mubr.bf16.mxu1 %v331_v36  ;;  %v620_v36 = vrot.slane %v615_v23, %v2050_v20 }
 0x120   :  { %v2074_v42 = vadd.f32 %v317_v40, %v82_v22  ;;  %v319_v43 = vpop.f32.mrb[7].mxu0  ;;  %559 = vmatmul.mubr.bf16.vlgmr.msra.gmra.mrb[0].mxu1 %v330_v38  ;;  %v326_v48 = vmul.f32 %v2072_v41, %v2072_v41  ;;  %v624_v40 = vrot.slane %v615_v23, %v2045_v18 }
 0x121   :  { %v2076_v44 = vadd.f32 %v319_v43, %v86_v21  ;;  %v327_v46 = vmul.f32 %v2070_v39, %v2070_v39 }
 0x122   :  { %v328_v45 = vmul.f32 %v2074_v42, %v2074_v42 }
 0x123   :  { %v329_v47 = vmul.f32 %v2076_v44, %v2076_v44 }
 0x124   :  { %v332_v50 = vpack.c.bf16 %v328_v45, %v326_v48 }
 0x125   :  { %v333_v49 = vpack.c.bf16 %v329_v47, %v327_v46 }
 0x127   :  { %568 = vmatprep.mubr.bf16.mxu1 %v333_v49 }
 0x128   :  { %569 = vmatmul.mubr.bf16.gmra.mrb[4].mxu1 %v332_v50 }
 0x1f3   :  { %v560_v7 = vpop.f32.mrb[0].mxu1 }
 0x1f4   :  { %v561_v8 = vadd.f32 1e-06, %v560_v7  ;;  %v562_v9 = vpop.f32.mrb[1].mxu1 }
 0x1f5   :  { %v563_v10 = vadd.f32 1e-06, %v562_v9  ;;  %v564_v11 = vpop.f32.mrb[2].mxu1 }
 0x1f6   :  { %1684 = vrsqrt.f32 %v561_v8  ;;  %v565_v12 = vadd.f32 1e-06, %v564_v11  ;;  %v566_v13 = vpop.f32.mrb[3].mxu1 }
 0x1f7   :  { %1686 = vrsqrt.f32 %v563_v10  ;;  %v567_v14 = vadd.f32 1e-06, %v566_v13 }
 0x1f8   :  { %1688 = vrsqrt.f32 %v565_v12 }
 0x1f9   :  { %1690 = vrsqrt.f32 %v567_v14 }
 0x1fb   :  { %v570_v15 = vpop.f32.mrb[4].mxu1 }
 0x1fc   :  { %v571_v17 = vadd.f32 1e-06, %v570_v15  ;;  %v572_v19 = vpop.f32.mrb[5].mxu1 }
 0x1fd   :  { %v573_v21 = vadd.f32 1e-06, %v572_v19  ;;  %v574_v22 = vpop.f32.mrb[6].mxu1 }
 0x1fe   :  { %1692 = vrsqrt.f32 %v571_v17  ;;  %v575_v24 = vadd.f32 1e-06, %v574_v22  ;;  %v576_v26 = vpop.f32.mrb[7].mxu1 }
 0x1ff   :  { %1694 = vrsqrt.f32 %v573_v21  ;;  %v577_v31 = vadd.f32 1e-06, %v576_v26 }
 0x200   :  { %v1685_v32 = vpop.eup %1684  ;;  %1696 = vrsqrt.f32 %v575_v24 }
 0x201   :  { %v1687_v34 = vpop.eup %1686  ;;  %v587_v35 = vmul.f32 %v1685_v32, %v2056_v27  ;;  %1698 = vrsqrt.f32 %v577_v31 }
 0x202   :  { %v1689_v37 = vpop.eup %1688  ;;  %v588_v38 = vmul.f32 %v1687_v34, %v2054_v25 }
 0x203   :  { %v1691_v43 = vpop.eup %1690  ;;  %v607_v45 = vmul.f32 %v600_v29, %v587_v35  ;;  %v589_v46 = vmul.f32 %v1689_v37, %v2058_v28 }
 0x204   :  { %v590_v47 = vmul.f32 %v1691_v43, %v2060_v30  ;;  %v608_v48 = vmul.f32 %v604_v33, %v588_v38 }
 0x205   :  { %v627_v49 = vadd.f32 %v620_v36, %v607_v45  ;;  %v609_v50 = vmul.f32 %v600_v29, %v589_v46 }
 0x206   :  { %v610_v51 = vmul.f32 %v604_v33, %v590_v47  ;;  %v628_v52 = vadd.f32 %v624_v40, %v608_v48 }
 0x207   :  { %v643_v27 = vmul.f32 0.70710677, %v627_v49  ;;  %v629_v53 = vadd.f32 %v620_v36, %v609_v50  ;;  %v635_v13 = vmul.f32 0.5, %v627_v49 }
 0x208   :  { %v1693_v54 = vpop.eup %1692  ;;  %v630_v55 = vadd.f32 %v624_v40, %v610_v51  ;;  %v644_v56 = vmul.f32 0.70710677, %v628_v52  ;;  %v636_v16 = vmul.f32 0.5, %v628_v52 }
 0x209   :  { %v1695_v57 = vpop.eup %1694  ;;  %1700 = verf.f32 %v643_v27  ;;  %v645_v25 = vmul.f32 0.70710677, %v629_v53  ;;  %v591_v58 = vmul.f32 %v1693_v54, %v2072_v41  ;;  %v637_v14 = vmul.f32 0.5, %v629_v53  ;;  %v711_v27 = vld [vmem:[%s2351_s7] sm:$0x3] }
 0x20a   :  { %v1697_v59 = vpop.eup %1696  ;;  %v592_v28 = vmul.f32 %v1695_v57, %v2070_v39  ;;  %v646_v60 = vmul.f32 0.70710677, %v630_v55  ;;  %1702 = verf.f32 %v644_v56  ;;  %v638_v17 = vmul.f32 0.5, %v630_v55 }
 0x20b   :  { %v1699_v30 = vpop.eup %1698  ;;  %1704 = verf.f32 %v645_v25  ;;  %v593_v61 = vmul.f32 %v1697_v59, %v2074_v42  ;;  %v611_v62 = vmul.f32 %v600_v29, %v591_v58  ;;  %v716_v53 = vrot.slane %v711_v27, %v2050_v20 }
 0x20c   :  { %v594_v63 = vmul.f32 %v1699_v30, %v2076_v44  ;;  %1706 = verf.f32 %v646_v60  ;;  %v612_v0 = vmul.f32 %v604_v33, %v592_v28  ;;  %v720_v54 = vrot.slane %v711_v27, %v2045_v18  ;;  %v1651_v27 = vld [vmem:[%s2352_s10 + $0x50] ss:$8 sps:$4 sm:$0xff]  }
 0x20d   :  { %v613_v1 = vmul.f32 %v600_v29, %v593_v61  ;;  %v631_v2 = vadd.f32 %v620_v36, %v611_v62 }
 0x20e   :  { %v614_v3 = vmul.f32 %v604_v33, %v594_v63  ;;  %v632_v4 = vadd.f32 %v624_v40, %v612_v0 }
 0x20f   :  { %v633_v5 = vadd.f32 %v620_v36, %v613_v1  ;;  %v647_v41 = vmul.f32 0.70710677, %v631_v2  ;;  %v639_v37 = vmul.f32 0.5, %v631_v2 }
 0x210   :  { %v634_v6 = vadd.f32 %v624_v40, %v614_v3  ;;  %v648_v7 = vmul.f32 0.70710677, %v632_v4  ;;  %v640_v43 = vmul.f32 0.5, %v632_v4 }
 0x211   :  { %v649_v39 = vmul.f32 0.70710677, %v633_v5  ;;  %1708 = verf.f32 %v647_v41  ;;  %v641_v38 = vmul.f32 0.5, %v633_v5 }
 0x212   :  { %v650_v8 = vmul.f32 0.70710677, %v634_v6  ;;  %1710 = verf.f32 %v648_v7  ;;  %v642_v45 = vmul.f32 0.5, %v634_v6  ;;  %v1636_v7 = vld [vmem:[%s2352_s10] ss:$8 sps:$4 sm:$0xff]  }
 0x213   :  { %v1701_v9 = vpop.eup %1700  ;;  %1712 = verf.f32 %v649_v39  ;;  %v1638_v39 = vld [vmem:[%s2352_s10 + $0x4] ss:$8 sps:$4 sm:$0xff]  }
 0x214   :  { %v1703_v42 = vpop.eup %1702  ;;  %v659_v10 = vadd.f32 1.0, %v1701_v9  ;;  %1714 = verf.f32 %v650_v8  ;;  %v1641_v8 = vld [vmem:[%s2352_s10 + $0x14] ss:$8 sps:$4 sm:$0xff]   ;;  %1289 = vmatprep.subr.bf16.mxu1 %v1638_v39  ;;  %v1639_v9 = vld [vmem:[%s2352_s10 + $0x10] ss:$8 sps:$4 sm:$0xff]  }
 0x215   :  { %v1705_v44 = vpop.eup %1704  ;;  %v660_v11 = vadd.f32 1.0, %v1703_v42  ;;  %1290 = vmatpush1.bf16.msra.mxu1 %v1636_v7  ;;  %v1644_v42 = vld [vmem:[%s2352_s10 + $0x24] ss:$8 sps:$4 sm:$0xff]  }
 0x216   :  { %v1707_v12 = vpop.eup %1706  ;;  %v661_v15 = vadd.f32 1.0, %v1705_v44  ;;  %v667_v21 = vmul.f32 %v659_v10, %v635_v13  ;;  %1291 = vmatprep.subr.bf16.mxu1 %v1641_v8  ;;  %v1642_v10 = vld [vmem:[%s2352_s10 + $0x20] ss:$8 sps:$4 sm:$0xff]   ;;  %v1647_v44 = vld [vmem:[%s2352_s10 + $0x34] ss:$8 sps:$4 sm:$0xff]  }
 0x217   :  { %v662_v19 = vadd.f32 1.0, %v1707_v12  ;;  %v668_v23 = vmul.f32 %v660_v11, %v636_v16  ;;  %v1645_v11 = vld [vmem:[%s2352_s10 + $0x30] ss:$8 sps:$4 sm:$0xff]   ;;  %v1650_v12 = vld [vmem:[%s2352_s10 + $0x44] ss:$8 sps:$4 sm:$0xff]  }
 0x218   :  { %v669_v22 = vmul.f32 %v661_v15, %v637_v14  ;;  %v1648_v13 = vld [vmem:[%s2352_s10 + $0x40] ss:$8 sps:$4 sm:$0xff]  }
 0x219   :  { %v670_v24 = vmul.f32 %v662_v19, %v638_v17  ;;  %1292 = vmatpush1.bf16.msra.mxu1 %v1639_v9 }
 0x21a   :  { %v675_v26 = vpack.c.bf16 %v669_v22, %v667_v21  ;;  %1293 = vmatprep.subr.bf16.mxu1 %v1644_v42 }
 0x21b   :  { %v1709_v29 = vpop.eup %1708  ;;  %v676_v31 = vpack.c.bf16 %v670_v24, %v668_v23 }
 0x21c   :  { %v1711_v32 = vpop.eup %1710  ;;  %v663_v33 = vadd.f32 1.0, %v1709_v29 }
 0x21d   :  { %v1713_v34 = vpop.eup %1712  ;;  %915 = vmatprep.mubr.bf16.mxu0 %v676_v31  ;;  %v664_v35 = vadd.f32 1.0, %v1711_v32  ;;  %1294 = vmatpush1.bf16.msra.mxu1 %v1642_v10 }
 0x21e   :  { %v1715_v36 = vpop.eup %1714  ;;  %916 = vmatmul.mubr.bf16.vlgmr.msra.gmra.mrb[8].mxu0 %v675_v26  ;;  %v665_v40 = vadd.f32 1.0, %v1713_v34  ;;  %v671_v47 = vmul.f32 %v663_v33, %v639_v37  ;;  %1295 = vmatprep.subr.bf16.mxu1 %v1647_v44  ;;  %v1001_v44 = vld [vmem:[%s2353_s8] sm:$0x3] }
 0x21f   :  { %v666_v46 = vadd.f32 1.0, %v1715_v36  ;;  %v672_v49 = vmul.f32 %v664_v35, %v640_v43 }
 0x220   :  { %v673_v48 = vmul.f32 %v665_v40, %v641_v38 }
 0x221   :  { %v674_v50 = vmul.f32 %v666_v46, %v642_v45  ;;  %1296 = vmatpush1.bf16.msra.mxu1 %v1645_v11 }
 0x222   :  { %v677_v51 = vpack.c.bf16 %v673_v48, %v671_v47  ;;  %1297 = vmatprep.subr.bf16.mxu1 %v1650_v12 }
 0x223   :  { %v678_v52 = vpack.c.bf16 %v674_v50, %v672_v49 }
 0x225   :  { %925 = vmatprep.mubr.bf16.mxu0 %v678_v52  ;;  %1298 = vmatpush1.bf16.msra.mxu1 %v1648_v13  ;;  %v1653_v52 = vld [vmem:[%s2352_s10 + $0x54] ss:$8 sps:$4 sm:$0xff]   ;;  %v1021_v13 = vld [vmem:[%s2354_s9] sm:$0x3] }
 0x226   :  { %926 = vmatmul.mubr.bf16.gmra.mrb[12].mxu0 %v677_v51  ;;  %1299 = vmatprep.subr.bf16.mxu1 %v1653_v52 }
 0x229   :  { %1300 = vmatpush1.bf16.msra.mxu1 %v1651_v27 }
 0x2f1   :  { %v917_v55 = vpop.f32.mrb[8].mxu0 }
 0x2f2   :  { %v918_v56 = vadd.f32 %v917_v55, %v716_v53  ;;  %v919_v57 = vpop.f32.mrb[9].mxu0  ;;  %v1659_v55 = vld [vmem:[%s2352_s10 + $0x74] ss:$8 sps:$4 sm:$0xff]  }
 0x2f3   :  { %v920_v25 = vadd.f32 %v919_v57, %v720_v54  ;;  %v921_v58 = vpop.f32.mrb[10].mxu0  ;;  %v1662_v57 = vld [vmem:[%s2352_s10 + $0x84] ss:$8 sps:$4 sm:$0xff]  }
 0x2f4   :  { %v923_v59 = vpop.f32.mrb[11].mxu0  ;;  %v922_v28 = vadd.f32 %v921_v58, %v716_v53  ;;  %v1665_v58 = vld [vmem:[%s2352_s10 + $0x94] ss:$8 sps:$4 sm:$0xff]  }
 0x2f5   :  { %v924_v60 = vadd.f32 %v923_v59, %v720_v54  ;;  %v936_v30 = vadd.f32 %v920_v25, %v918_v56  ;;  %v1663_v59 = vld [vmem:[%s2352_s10 + $0x90] ss:$8 sps:$4 sm:$0xff]  }
 0x2f7   :  { %937 = vadd.xlane.f32.xlu0 %v936_v30  ;;  %v939_v62 = vadd.f32 %v924_v60, %v922_v28  ;;  %v1671_v30 = vld [vmem:[%s2352_s10 + $0xb4] ss:$8 sps:$4 sm:$0xff]  }
 0x2f9   :  { %v927_v61 = vpop.f32.mrb[12].mxu0 }
 0x2fa   :  { %v928_v63 = vadd.f32 %v927_v61, %v716_v53  ;;  %v929_v0 = vpop.f32.mrb[13].mxu0  ;;  %v1669_v61 = vld [vmem:[%s2352_s10 + $0xb0] ss:$8 sps:$4 sm:$0xff]  }
 0x2fb   :  { %v930_v1 = vadd.f32 %v929_v0, %v720_v54  ;;  %v931_v2 = vpop.f32.mrb[14].mxu0  ;;  %940 = vadd.xlane.f32.xlu0 %v939_v62  ;;  %v1672_v62 = vld [vmem:[%s2352_s10 + $0xc0] ss:$8 sps:$4 sm:$0xff]   ;;  %v1677_v0 = vld [vmem:[%s2352_s10 + $0xd4] ss:$8 sps:$4 sm:$0xff]  }
 0x2fc   :  { %v933_v3 = vpop.f32.mrb[15].mxu0  ;;  %v932_v4 = vadd.f32 %v931_v2, %v716_v53  ;;  %v1656_v53 = vld [vmem:[%s2352_s10 + $0x64] ss:$8 sps:$4 sm:$0xff]  }
 0x2fd   :  { %v934_v5 = vadd.f32 %v933_v3, %v720_v54  ;;  %v942_v41 = vadd.f32 %v930_v1, %v928_v63  ;;  %v1654_v54 = vld [vmem:[%s2352_s10 + $0x60] ss:$8 sps:$4 sm:$0xff]   ;;  %1301 = vmatprep.subr.bf16.mxu1 %v1656_v53  ;;  %v1680_v2 = vld [vmem:[%s2352_s10 + $0xe4] ss:$8 sps:$4 sm:$0xff]  }
 0x2fe   :  { %1302 = vmatpush1.bf16.msra.mxu1 %v1654_v54  ;;  %v1678_v3 = vld [vmem:[%s2352_s10 + $0xe0] ss:$8 sps:$4 sm:$0xff]  }
 0x2ff   :  { %943 = vadd.xlane.f32.xlu1 %v942_v41  ;;  %v945_v6 = vadd.f32 %v934_v5, %v932_v4  ;;  %1303 = vmatprep.subr.bf16.mxu1 %v1659_v55 }
 0x303   :  { %946 = vadd.xlane.f32.xlu1 %v945_v6 }
 0x384   :  { %v938_v14 = vpop.xlane.xlu0 %937 }
 0x385   :  { %v949_v15 = vmul.f32 0.00390625, %v938_v14 }
 0x387   :  { %v2199_v16 = vsub.f32 %v918_v56, %v949_v15  ;;  %v2201_v17 = vsub.f32 %v920_v25, %v949_v15  ;;  %v1657_v56 = vld [vmem:[%s2352_s10 + $0x70] ss:$8 sps:$4 sm:$0xff]   ;;  %v1660_v25 = vld [vmem:[%s2352_s10 + $0x80] ss:$8 sps:$4 sm:$0xff]   ;;  %v1006_v15 = vrot.slane %v1001_v44, %v2050_v20 }
 0x388   :  { %v941_v19 = vpop.xlane.xlu0 %940  ;;  %1304 = vmatpush1.bf16.msra.mxu1 %v1657_v56 }
 0x389   :  { %v950_v21 = vmul.f32 0.00390625, %v941_v19  ;;  %v961_v22 = vmul.f32 %v2199_v16, %v2199_v16  ;;  %v962_v23 = vmul.f32 %v2201_v17, %v2201_v17  ;;  %1305 = vmatprep.subr.bf16.mxu1 %v1662_v57  ;;  %v1010_v19 = vrot.slane %v1001_v44, %v2045_v18 }
 0x38b   :  { %v2207_v24 = vsub.f32 %v922_v28, %v950_v21  ;;  %v2209_v26 = vsub.f32 %v924_v60, %v950_v21  ;;  %v969_v29 = vadd.f32 %v962_v23, %v961_v22  ;;  %v1668_v28 = vld [vmem:[%s2352_s10 + $0xa4] ss:$8 sps:$4 sm:$0xff]   ;;  %v1666_v60 = vld [vmem:[%s2352_s10 + $0xa0] ss:$8 sps:$4 sm:$0xff]   ;;  %v1026_v23 = vrot.slane %v1021_v13, %v2050_v20 }
 0x38c   :  { %v944_v31 = vpop.xlane.xlu1 %943  ;;  %1306 = vmatpush1.bf16.msra.mxu1 %v1660_v25 }
 0x38d   :  { %v951_v32 = vmul.f32 0.00390625, %v944_v31  ;;  %970 = vadd.xlane.f32.xlu0 %v969_v29  ;;  %v963_v33 = vmul.f32 %v2207_v24, %v2207_v24  ;;  %v964_v34 = vmul.f32 %v2209_v26, %v2209_v26  ;;  %1307 = vmatprep.subr.bf16.mxu1 %v1665_v58 }
 0x38f   :  { %v2215_v35 = vsub.f32 %v928_v63, %v951_v32  ;;  %v2217_v36 = vsub.f32 %v930_v1, %v951_v32  ;;  %v972_v37 = vadd.f32 %v964_v34, %v963_v33  ;;  %v1674_v63 = vld [vmem:[%s2352_s10 + $0xc4] ss:$8 sps:$4 sm:$0xff]   ;;  %v1675_v1 = vld [vmem:[%s2352_s10 + $0xd0] ss:$8 sps:$4 sm:$0xff]   ;;  %v1030_v32 = vrot.slane %v1021_v13, %v2045_v18 }
 0x390   :  { %v947_v38 = vpop.xlane.xlu1 %946  ;;  %1308 = vmatpush1.bf16.msra.mxu1 %v1663_v59 }
 0x391   :  { %v952_v40 = vmul.f32 0.00390625, %v947_v38  ;;  %973 = vadd.xlane.f32.xlu1 %v972_v37  ;;  %v965_v43 = vmul.f32 %v2215_v35, %v2215_v35  ;;  %v966_v45 = vmul.f32 %v2217_v36, %v2217_v36  ;;  %1309 = vmatprep.subr.bf16.mxu1 %v1668_v28 }
 0x393   :  { %v2223_v46 = vsub.f32 %v932_v4, %v952_v40  ;;  %v2225_v47 = vsub.f32 %v934_v5, %v952_v40  ;;  %v975_v48 = vadd.f32 %v966_v45, %v965_v43  ;;  %v1683_v4 = vld [vmem:[%s2352_s10 + $0xf4] ss:$8 sps:$4 sm:$0xff]   ;;  %v1681_v5 = vld [vmem:[%s2352_s10 + $0xf0] ss:$8 sps:$4 sm:$0xff]  }
 0x394   :  { %1310 = vmatpush1.bf16.msra.mxu1 %v1666_v60 }
 0x395   :  { %976 = vadd.xlane.f32.xlu0 %v975_v48  ;;  %v967_v49 = vmul.f32 %v2223_v46, %v2223_v46  ;;  %v968_v50 = vmul.f32 %v2225_v47, %v2225_v47  ;;  %1311 = vmatprep.subr.bf16.mxu1 %v1671_v30 }
 0x397   :  { %v978_v51 = vadd.f32 %v968_v50, %v967_v49 }
 0x398   :  { %1312 = vmatpush1.bf16.msra.mxu1 %v1669_v61 }
 0x399   :  { %979 = vadd.xlane.f32.xlu1 %v978_v51  ;;  %1313 = vmatprep.subr.bf16.mxu1 %v1674_v63 }
 0x39c   :  { %1314 = vmatpush1.bf16.msra.mxu1 %v1672_v62 }
 0x39d   :  { %1315 = vmatprep.subr.bf16.mxu1 %v1677_v0 }
 0x3a0   :  { %1316 = vmatpush1.bf16.msra.mxu1 %v1675_v1 }
 0x3a1   :  { %1317 = vmatprep.subr.bf16.mxu1 %v1680_v2 }
 0x3a4   :  { %1318 = vmatpush1.bf16.msra.mxu1 %v1678_v3 }
 0x3a5   :  { %1319 = vmatprep.subr.bf16.mxu1 %v1683_v4 }
 0x3a8   :  { %1320 = vmatpush1.bf16.msra.mxu1 %v1681_v5 }
 0x41a   :  { %v971_v41 = vpop.xlane.xlu0 %970 }
 0x41b   :  { %v981_v6 = vmul.f32 0.00390625, %v971_v41 }
 0x41d   :  { %v985_v7 = vadd.f32 1e-06, %v981_v6 }
 0x41e   :  { %v974_v39 = vpop.xlane.xlu1 %973 }
 0x41f   :  { %1716 = vrsqrt.f32 %v985_v7  ;;  %v982_v8 = vmul.f32 0.00390625, %v974_v39 }
 0x421   :  { %v986_v9 = vadd.f32 1e-06, %v982_v8 }
 0x422   :  { %v977_v42 = vpop.xlane.xlu0 %976 }
 0x423   :  { %1718 = vrsqrt.f32 %v986_v9  ;;  %v983_v10 = vmul.f32 0.00390625, %v977_v42 }
 0x425   :  { %v987_v11 = vadd.f32 1e-06, %v983_v10 }
 0x426   :  { %v980_v12 = vpop.xlane.xlu1 %979 }
 0x427   :  { %1720 = vrsqrt.f32 %v987_v11  ;;  %v984_v14 = vmul.f32 0.00390625, %v980_v12 }
 0x429   :  { %v1717_v21 = vpop.eup %1716  ;;  %v988_v22 = vadd.f32 1e-06, %v984_v14 }
 0x42a   :  { %v993_v29 = vmul.f32 %v1717_v21, %v2199_v16  ;;  %v994_v31 = vmul.f32 %v1717_v21, %v2201_v17 }
 0x42b   :  { %1722 = vrsqrt.f32 %v988_v22 }
 0x42c   :  { %v1013_v33 = vmul.f32 %v1006_v15, %v993_v29  ;;  %v1014_v34 = vmul.f32 %v1010_v19, %v994_v31 }
 0x42d   :  { %v1719_v37 = vpop.eup %1718 }
 0x42e   :  { %v1033_v38 = vadd.f32 %v1026_v23, %v1013_v33  ;;  %v995_v40 = vmul.f32 %v1719_v37, %v2207_v24  ;;  %v996_v43 = vmul.f32 %v1719_v37, %v2209_v26  ;;  %v1034_v45 = vadd.f32 %v1030_v32, %v1014_v34 }
 0x430   :  { %v1015_v48 = vmul.f32 %v1006_v15, %v995_v40  ;;  %v1016_v49 = vmul.f32 %v1010_v19, %v996_v43  ;;  %v1049_v51 = vmul.f32 0.70710677, %v1033_v38  ;;  %v1050_v52 = vmul.f32 0.70710677, %v1034_v45 }
 0x431   :  { %v1721_v50 = vpop.eup %1720  ;;  %v1042_v4 = vmul.f32 0.5, %v1034_v45  ;;  %v1041_v6 = vmul.f32 0.5, %v1033_v38 }
 0x432   :  { %v1035_v16 = vadd.f32 %v1026_v23, %v1015_v48  ;;  %v997_v17 = vmul.f32 %v1721_v50, %v2215_v35  ;;  %v998_v27 = vmul.f32 %v1721_v50, %v2217_v36  ;;  %v1036_v53 = vadd.f32 %v1030_v32, %v1016_v49  ;;  %v1117_v48 = vld [vmem:[%s2355_s11] sm:$0x3] }
 0x433   :  { %1724 = verf.f32 %v1050_v52  ;;  %v1122_v49 = vrot.slane %v1117_v48, %v2050_v20  ;;  %v1126_v50 = vrot.slane %v1117_v48, %v2045_v18 }
 0x434   :  { %v1051_v54 = vmul.f32 0.70710677, %v1035_v16  ;;  %v1052_v55 = vmul.f32 0.70710677, %v1036_v53  ;;  %1726 = verf.f32 %v1049_v51  ;;  %v1018_v24 = vmul.f32 %v1010_v19, %v998_v27 }
 0x435   :  { %v1723_v56 = vpop.eup %1722  ;;  %v1017_v57 = vmul.f32 %v1006_v15, %v997_v17  ;;  %v1044_v5 = vmul.f32 0.5, %v1036_v53  ;;  %v1043_v7 = vmul.f32 0.5, %v1035_v16 }
 0x436   :  { %v999_v26 = vmul.f32 %v1723_v56, %v2223_v46  ;;  %v1000_v25 = vmul.f32 %v1723_v56, %v2225_v47  ;;  %1728 = verf.f32 %v1052_v55  ;;  %v1038_v58 = vadd.f32 %v1030_v32, %v1018_v24 }
 0x437   :  { %1730 = verf.f32 %v1051_v54  ;;  %v1037_v59 = vadd.f32 %v1026_v23, %v1017_v57 }
 0x438   :  { %v1020_v28 = vmul.f32 %v1010_v19, %v1000_v25  ;;  %v1019_v35 = vmul.f32 %v1006_v15, %v999_v26  ;;  %v1054_v60 = vmul.f32 0.70710677, %v1038_v58  ;;  %v1046_v22 = vmul.f32 0.5, %v1038_v58 }
 0x439   :  { %v1053_v36 = vmul.f32 0.70710677, %v1037_v59  ;;  %v1045_v31 = vmul.f32 0.5, %v1037_v59 }
 0x43a   :  { %v1040_v30 = vadd.f32 %v1030_v32, %v1020_v28  ;;  %v1039_v61 = vadd.f32 %v1026_v23, %v1019_v35  ;;  %1732 = verf.f32 %v1054_v60 }
 0x43b   :  { %1734 = verf.f32 %v1053_v36 }
 0x43c   :  { %v1056_v62 = vmul.f32 0.70710677, %v1040_v30  ;;  %v1055_v63 = vmul.f32 0.70710677, %v1039_v61  ;;  %v1048_v23 = vmul.f32 0.5, %v1040_v30  ;;  %v1047_v32 = vmul.f32 0.5, %v1039_v61 }
 0x43d   :  { %v1725_v0 = vpop.eup %1724 }
 0x43e   :  { %1736 = verf.f32 %v1056_v62  ;;  %v1727_v1 = vpop.eup %1726  ;;  %v1066_v46 = vadd.f32 1.0, %v1725_v0 }
 0x43f   :  { %1738 = verf.f32 %v1055_v63  ;;  %v1065_v2 = vadd.f32 1.0, %v1727_v1 }
 0x440   :  { %v1729_v47 = vpop.eup %1728  ;;  %v1074_v8 = vmul.f32 %v1066_v46, %v1042_v4 }
 0x441   :  { %v1731_v3 = vpop.eup %1730  ;;  %v1068_v41 = vadd.f32 1.0, %v1729_v47  ;;  %v1073_v42 = vmul.f32 %v1065_v2, %v1041_v6 }
 0x442   :  { %v1067_v39 = vadd.f32 1.0, %v1731_v3 }
 0x443   :  { %v1076_v9 = vmul.f32 %v1068_v41, %v1044_v5 }
 0x444   :  { %v1075_v10 = vmul.f32 %v1067_v39, %v1043_v7  ;;  %v1733_v44 = vpop.eup %1732 }
 0x445   :  { %v1082_v11 = vpack.c.bf16 %v1076_v9, %v1074_v8  ;;  %v1735_v13 = vpop.eup %1734  ;;  %v1070_v14 = vadd.f32 1.0, %v1733_v44 }
 0x446   :  { %v1081_v12 = vpack.c.bf16 %v1075_v10, %v1073_v42  ;;  %v1069_v19 = vadd.f32 1.0, %v1735_v13 }
 0x447   :  { %1321 = vmatprep.mubr.bf16.mxu1 %v1082_v11  ;;  %v1078_v34 = vmul.f32 %v1070_v14, %v1046_v22 }
 0x448   :  { %v1737_v15 = vpop.eup %1736  ;;  %1322 = vmatmul.mubr.bf16.vlgmr.msra.gmra.mrb[8].mxu1 %v1081_v12  ;;  %v1077_v38 = vmul.f32 %v1069_v19, %v1045_v31 }
 0x449   :  { %v1739_v21 = vpop.eup %1738  ;;  %v1072_v29 = vadd.f32 1.0, %v1737_v15 }
 0x44a   :  { %v1071_v33 = vadd.f32 1.0, %v1739_v21 }
 0x44b   :  { %v1080_v37 = vmul.f32 %v1072_v29, %v1048_v23 }
 0x44c   :  { %v1079_v40 = vmul.f32 %v1071_v33, %v1047_v32 }
 0x44d   :  { %v1084_v43 = vpack.c.bf16 %v1080_v37, %v1078_v34 }
 0x44e   :  { %v1083_v45 = vpack.c.bf16 %v1079_v40, %v1077_v38 }
 0x44f   :  { %1331 = vmatprep.mubr.bf16.mxu1 %v1084_v43 }
 0x450   :  { %1332 = vmatmul.mubr.bf16.gmra.mrb[12].mxu1 %v1083_v45 }
 0x51b   :  { %v1323_v51 = vpop.f32.mrb[8].mxu1 }
 0x51c   :  { %v1324_v52 = vadd.f32 %v1323_v51, %v1122_v49  ;;  %v1325_v16 = vpop.f32.mrb[9].mxu1 }
 0x51d   :  { %v1326_v17 = vadd.f32 %v1325_v16, %v1126_v50  ;;  %v1327_v27 = vpop.f32.mrb[10].mxu1 }
 0x51e   :  { %1342 = vst [vmem:[%s2356_s12] sm:$0xff] %v1324_v52  ;;  %v1328_v53 = vadd.f32 %v1327_v27, %v1122_v49  ;;  %v1329_v54 = vpop.f32.mrb[11].mxu1 }
 0x51f   :  { %1343 = vst [vmem:[%s2356_s12 + $0x8] sm:$0xff] %v1326_v17  ;;  %v1330_v55 = vadd.f32 %v1329_v54, %v1126_v50 }
 0x520   :  { %1344 = vst [vmem:[%s2356_s12 + $0x10] sm:$0xff] %v1328_v53 }
 0x521   :  { %1345 = vst [vmem:[%s2356_s12 + $0x18] sm:$0xff] %v1330_v55 }
 0x523   :  { %v1333_v18 = vpop.f32.mrb[12].mxu1 }
 0x524   :  { %v1334_v20 = vadd.f32 %v1333_v18, %v1122_v49  ;;  %v1335_v56 = vpop.f32.mrb[13].mxu1 }
 0x525   :  { %v1336_v24 = vadd.f32 %v1335_v56, %v1126_v50  ;;  %v1337_v57 = vpop.f32.mrb[14].mxu1 }
 0x526   :  { %1346 = vst [vmem:[%s2356_s12 + $0x20] sm:$0xff] %v1334_v20  ;;  %v1338_v26 = vadd.f32 %v1337_v57, %v1122_v49  ;;  %v1339_v25 = vpop.f32.mrb[15].mxu1 }
 0x527   :  { %1347 = vst [vmem:[%s2356_s12 + $0x28] sm:$0xff] %v1336_v24  ;;  %v1340_v58 = vadd.f32 %v1339_v25, %v1126_v50 }
 0x528   :  { %1348 = vst [vmem:[%s2356_s12 + $0x30] sm:$0xff] %v1338_v26 }
 0x529   :  { %1349 = vst [vmem:[%s2356_s12 + $0x38] sm:$0xff] %v1340_v58 }

</bundles_post_ra>
